<compile_context>
chip_gen: v6e
topology: v6e:2x2x1
jax: 0.10.0
libtpu: 0.0.40
codegen_flags: <defaults>
</compile_context>

<pallas_src>
import functools

import jax
import jax.numpy as jnp
from jax.experimental import pallas as pl
from jax.experimental.pallas import tpu as pltpu


def _round_up(x, m):
    return ((x + m - 1) // m) * m


def _tanh_in_bf16():
    """bf16 tanh only on chips with bf16 EUP/VPU (v6e, v7x)."""
    try:
        kind = jax.devices()[0].device_kind.lower()
    except Exception:
        return False
    return ("v6" in kind) or ("v7" in kind)


def _policy_kernel(x_ref, w1_ref, w2_ref, bias_ref, o_ref, *, tanh_bf16):
    # In-kernel f32 -> bf16 cast of the activations (VPU; avoids a separate
    # wrapper-side XLA cast/pad pass over x in HBM).
    x = x_ref[...].astype(jnp.bfloat16)
    # fc1 (no bias): bf16 operands, f32 accumulation on the MXU.
    acc = jnp.dot(x, w1_ref[...], preferred_element_type=jnp.float32)
    if tanh_bf16:
        # v6e/v7x: packed bf16 tanh on the EUP, result is already the bf16 MXU
        # operand for fc2 (no extra cast pass).
        h = jnp.tanh(acc.astype(jnp.bfloat16))
    else:
        # v5e and older: f32 tanh, then cast for the MXU.
        h = jnp.tanh(acc).astype(jnp.bfloat16)
    # fc2 (no bias); 1/temp already folded into w2.
    logits = jnp.dot(h, w2_ref[...], preferred_element_type=jnp.float32)
    # Additive mask row: 0 for real action lanes, -1e30 for padded lanes
    # (one VPU add instead of iota+cmp+select, and no -inf arithmetic).
    logits = logits + bias_ref[...]
    # Numerically stable softmax over dim=1 (f32 math).
    m = jnp.max(logits, axis=1, keepdims=True)
    e = jnp.exp(logits - m)
    s = jnp.sum(e, axis=1, keepdims=True)
    o_ref[...] = (e * pl.reciprocal(s, approx=True)).astype(o_ref.dtype)


def prepare_policy_params(w1, w2, temp=1.0):
    """One-time parameter prep (outside the hot path).

    w1: (hid_size, obs_dim)  -- PyTorch fc1.weight layout
    w2: (act_dim, hid_size)  -- PyTorch fc2.weight layout

    Returns bf16 weights transposed for x @ W, zero-padded to 128 lanes, with
    1/temp folded into W2, plus a (1, act_p) f32 additive mask row.
    """
    hid_size, obs_dim = w1.shape
    act_dim, hid_size2 = w2.shape
    assert hid_size == hid_size2
    hid_p = _round_up(hid_size, 128)
    act_p = _round_up(act_dim, 128)

    w1t = jnp.zeros((obs_dim, hid_p), jnp.float32)
    w1t = w1t.at[:, :hid_size].set(jnp.asarray(w1, jnp.float32).T)
    w2t = jnp.zeros((hid_p, act_p), jnp.float32)
    w2t = w2t.at[:hid_size, :act_dim].set(
        jnp.asarray(w2, jnp.float32).T / float(temp)
    )
    # Additive logit mask: 0 for real lanes, large-negative for padded lanes.
    lane = jnp.arange(act_p)[None, :]
    bias = jnp.where(lane < act_dim, 0.0, -1e30).astype(jnp.float32)
    return w1t.astype(jnp.bfloat16), w2t.astype(jnp.bfloat16), bias, act_dim


def _choose_batch_tile(B):
    """Balanced batch tiling: big tiles (amortize per-step overhead), but at
    least 2 (even) tiles for non-trivial B so both v7x TensorCores get work."""
    num_tiles = pl.cdiv(B, 2048)
    if B >= 64:
        num_tiles = max(num_tiles, 2)
        num_tiles += num_tiles & 1  # even number of tiles for 2-TC sharding
    TB = _round_up(pl.cdiv(B, num_tiles), 8)
    B_pad = _round_up(B, TB)
    return TB, B_pad


def policy_network_forward(pol_observes, w1p, w2p, bias, act_dim):
    """Forward pass. pol_observes: (B, obs_dim) f32; params from prepare_policy_params."""
    B, obs_dim = pol_observes.shape
    hid_p = w1p.shape[1]
    act_p = w2p.shape[1]

    TB, B_pad = _choose_batch_tile(B)

    x = jnp.asarray(pol_observes, jnp.float32)
    if B_pad != B:
        x = jnp.pad(x, ((0, B_pad - B), (0, 0)))

    grid = (B_pad // TB,)
    kernel = functools.partial(_policy_kernel, tanh_bf16=_tanh_in_bf16())

    cost = pl.CostEstimate(
        flops=2 * B_pad * (obs_dim * hid_p + hid_p * act_p),
        transcendentals=B_pad * (hid_p + act_p),
        bytes_accessed=(
            B_pad * obs_dim * 4            # f32 activations in
            + obs_dim * hid_p * 2          # bf16 W1
            + hid_p * act_p * 2            # bf16 W2
            + act_p * 4                    # f32 mask row
            + B_pad * act_p * 2            # bf16 probabilities out
        ),
    )

    out = pl.pallas_call(
        kernel,
        out_shape=jax.ShapeDtypeStruct((B_pad, act_p), jnp.bfloat16),
        grid=grid,
        in_specs=[
            pl.BlockSpec((TB, obs_dim), lambda i: (i, 0)),    # activations: pipelined
            pl.BlockSpec((obs_dim, hid_p), lambda i: (0, 0)),  # W1: VMEM-resident
            pl.BlockSpec((hid_p, act_p), lambda i: (0, 0)),    # W2: VMEM-resident
            pl.BlockSpec((1, act_p), lambda i: (0, 0)),        # mask row: VMEM-resident
        ],
        out_specs=pl.BlockSpec((TB, act_p), lambda i: (i, 0)),  # lane-dense bf16 store
        compiler_params=pltpu.CompilerParams(
            dimension_semantics=("parallel",),
        ),
        cost_estimate=cost,
    )(x, w1p, w2p, bias)

    # Slice off batch/lane padding, return f32 probabilities (reference dtype).
    return out[:B, :act_dim].astype(jnp.float32)


def _reference_forward(x, w1, w2, temp):
    h = jnp.tanh(x @ w1.T)
    logits = (h @ w2.T) / temp
    return jax.nn.softmax(logits, axis=1)


if __name__ == "__main__":
    # Shapes consistent with the module: hid1_mult=1 -> hid_size = obs_dim.
    obs_dim = 32
    hid1_mult = 1
    hid_size = obs_dim * hid1_mult
    act_dim = 16
    temp = 1.0

    key = jax.random.PRNGKey(0)
    kx, k1, k2 = jax.random.split(key, 3)
    # PyTorch Linear weight layouts.
    w1 = jax.random.normal(k1, (hid_size, obs_dim), dtype=jnp.float32) * 0.1
    w2 = jax.random.normal(k2, (act_dim, hid_size), dtype=jnp.float32) * 0.1

    # One-time parameter setup (transpose / pad / fold temp / mask row).
    w1p, w2p, bias, act_dim_out = prepare_policy_params(w1, w2, temp)

    ok = True
    # Small batch (single tile) and a mid batch (multi-tile + batch padding).
    for B in (8, 200):
        x = jax.random.normal(jax.random.fold_in(kx, B), (B, obs_dim),
                              dtype=jnp.float32)
        out = policy_network_forward(x, w1p, w2p, bias, act_dim_out)
        out = jax.block_until_ready(out)
        ref = _reference_forward(x, w1, w2, temp)
        assert out.shape == (B, act_dim)
        # bf16 matmul operands / bf16 output / approx reciprocal -> loose tol.
        err = float(jnp.max(jnp.abs(out - ref)))
        assert jnp.allclose(out, ref, atol=2e-2, rtol=2e-2), err
        # Rows of a softmax sum to ~1 (approx reciprocal + bf16 store).
        assert jnp.allclose(jnp.sum(out, axis=1), jnp.ones((B,)), atol=1e-2)
        ok = ok and True

    if ok:
        print("KERNEL_OK")
</pallas_src>

<mosaic_0001>
module attributes {stable_mosaic.version = 11 : i64} {
  func.func @_policy_kernel(%arg0: i32, %arg1: memref<8x32xf32, #tpu.memory_space<vmem>>, %arg2: memref<32x128xbf16, #tpu.memory_space<vmem>>, %arg3: memref<128x128xbf16, #tpu.memory_space<vmem>>, %arg4: memref<1x128xf32, #tpu.memory_space<vmem>>, %arg5: memref<8x128xbf16, #tpu.memory_space<vmem>>) attributes {dimension_semantics = [#tpu.dimension_semantics<parallel>], iteration_bounds = array<i64: 1>, scalar_prefetch = 0 : i64, scratch_operands = 0 : i64, tpu.core_type = #tpu.core_type<tc>, window_params = [{transform_indices = @transform_0, window_bounds = array<i64: 8, 32>}, {pipeline_mode = #tpu.pipeline_mode<synchronous>, transform_indices = @transform_1, window_bounds = array<i64: 32, 128>}, {pipeline_mode = #tpu.pipeline_mode<synchronous>, transform_indices = @transform_2, window_bounds = array<i64: 128, 128>}, {pipeline_mode = #tpu.pipeline_mode<synchronous>, transform_indices = @transform_3, window_bounds = array<i64: 1, 128>}, {transform_indices = @transform_4, window_bounds = array<i64: 8, 128>}]} {
    %c0 = arith.constant 0 : index
    %c0_0 = arith.constant 0 : index
    %0 = vector.load %arg1[%c0, %c0_0] : memref<8x32xf32, #tpu.memory_space<vmem>>, vector<8x32xf32>
    %1 = arith.truncf %0 : vector<8x32xf32> to vector<8x32xbf16>
    %c0_1 = arith.constant 0 : index
    %c0_2 = arith.constant 0 : index
    %2 = vector.load %arg2[%c0_1, %c0_2] : memref<32x128xbf16, #tpu.memory_space<vmem>>, vector<32x128xbf16>
    %cst = arith.constant dense<0.000000e+00> : vector<8x128xf32>
    %3 = tpu.matmul %1, %2, %cst {dimension_numbers = #tpu.dot_dimension_numbers<[1], [0], [0], [1], [0, 0, 1, 1], [], []>} : vector<8x32xbf16>, vector<32x128xbf16>, vector<8x128xf32> -> vector<8x128xf32>
    %4 = math.tanh %3 : vector<8x128xf32>
    %5 = arith.truncf %4 : vector<8x128xf32> to vector<8x128xbf16>
    %c0_3 = arith.constant 0 : index
    %c0_4 = arith.constant 0 : index
    %6 = vector.load %arg3[%c0_3, %c0_4] : memref<128x128xbf16, #tpu.memory_space<vmem>>, vector<128x128xbf16>
    %cst_5 = arith.constant dense<0.000000e+00> : vector<8x128xf32>
    %7 = tpu.matmul %5, %6, %cst_5 {dimension_numbers = #tpu.dot_dimension_numbers<[1], [0], [0], [1], [0, 0, 1, 1], [], []>} : vector<8x128xbf16>, vector<128x128xbf16>, vector<8x128xf32> -> vector<8x128xf32>
    %c0_6 = arith.constant 0 : index
    %c0_7 = arith.constant 0 : index
    %8 = vector.load %arg4[%c0_6, %c0_7] : memref<1x128xf32, #tpu.memory_space<vmem>>, vector<1x128xf32>
    %9 = vector.broadcast %8 : vector<1x128xf32> to vector<8x128xf32>
    %10 = arith.addf %7, %9 : vector<8x128xf32>
    %cst_8 = arith.constant dense<0xFF800000> : vector<8xf32>
    %11 = vector.multi_reduction <maximumf>, %10, %cst_8 [1] : vector<8x128xf32> to vector<8xf32>
    %12 = vector.shape_cast %11 : vector<8xf32> to vector<8x1xf32>
    %13 = vector.broadcast %12 : vector<8x1xf32> to vector<8x128xf32>
    %14 = arith.subf %10, %13 : vector<8x128xf32>
    %15 = math.exp %14 : vector<8x128xf32>
    %cst_9 = arith.constant dense<0.000000e+00> : vector<8xf32>
    %16 = vector.multi_reduction <add>, %15, %cst_9 [1] : vector<8x128xf32> to vector<8xf32>
    %17 = vector.shape_cast %16 : vector<8xf32> to vector<8x1xf32>
    %18 = tpu.reciprocal %17 {approx = true} : vector<8x1xf32> -> vector<8x1xf32>
    %19 = vector.broadcast %18 : vector<8x1xf32> to vector<8x128xf32>
    %20 = arith.mulf %15, %19 : vector<8x128xf32>
    %21 = arith.truncf %20 : vector<8x128xf32> to vector<8x128xbf16>
    %c0_10 = arith.constant 0 : index
    %c0_11 = arith.constant 0 : index
    %22 = vector.load %arg5[%c0_10, %c0_11] : memref<8x128xbf16, #tpu.memory_space<vmem>>, vector<8x128xbf16>
    tpu.vector_store %arg5[%c0_10, %c0_11], %21 {strides = array<i32>} : memref<8x128xbf16, #tpu.memory_space<vmem>>, vector<8x128xbf16>,
    return
  }
  func.func @transform_0(%arg0: i32) -> (i32, i32) {
    %c0_i32 = arith.constant 0 : i32
    %c0_i32_0 = arith.constant 0 : i32
    return %arg0, %c0_i32 : i32, i32
  }
  func.func @transform_1(%arg0: i32) -> (i32, i32) {
    %c0_i32 = arith.constant 0 : i32
    %c0_i32_0 = arith.constant 0 : i32
    %c0_i32_1 = arith.constant 0 : i32
    return %c0_i32, %c0_i32_0 : i32, i32
  }
  func.func @transform_2(%arg0: i32) -> (i32, i32) {
    %c0_i32 = arith.constant 0 : i32
    %c0_i32_0 = arith.constant 0 : i32
    %c0_i32_1 = arith.constant 0 : i32
    return %c0_i32, %c0_i32_0 : i32, i32
  }
  func.func @transform_3(%arg0: i32) -> (i32, i32) {
    %c0_i32 = arith.constant 0 : i32
    %c0_i32_0 = arith.constant 0 : i32
    %c0_i32_1 = arith.constant 0 : i32
    return %c0_i32, %c0_i32_0 : i32, i32
  }
  func.func @transform_4(%arg0: i32) -> (i32, i32) {
    %c0_i32 = arith.constant 0 : i32
    %c0_i32_0 = arith.constant 0 : i32
    return %arg0, %c0_i32 : i32, i32
  }
}

</mosaic_0001>

<bundles_post_ra>
// kernel: tpu_custom_call.1
= control target key start
LH: loop header
LB: loop body
LE: loop exit
PB: predicated region body
PF: predicated region fallthrough
CT: control target
= control target key end

     0   :  { %9 = vsyncpa [#allocation3], 0  ;;  %s470_s0 = inlined_call_operand.hbm [shape: f32[8,32], index: 0, kind: input, shape index: {}]   ;;  %s471_s1 = inlined_call_operand.hbm [shape: bf16[32,128], index: 1, kind: input, shape index: {}]   ;;  %s472_s2 = inlined_call_operand.hbm [shape: bf16[128,128], index: 2, kind: input, shape index: {}]   ;;  %s473_s3 = inlined_call_operand.vmem [shape: f32[1,128], index: 3, kind: input, shape index: {}]   ;;  %s474_s4 = inlined_call_operand.hbm [shape: bf16[8,128], index: 4, kind: output, shape index: {}]  }
   0x1   :  { %10 = vsyncpa [#allocation6], 0 }
   0x2   :  { %11 = vsyncpa [#allocation4], 0  ;;  %s422_s15 = smov [#allocation5]  }
   0x3   :  { %s27_s16 = sshll.u32 %s422_s15, 4  ;;  %s28_s16 = int_to_ptr.vmem [resolvable:$true] %s27_s16 }
   0x4   :  { %s344_s17 = scalar_lea.vmem %s28_s16, 256  ;;  %p349_p1 = scmp.lt.s32.totalorder %s28_s16, %s28_s16 }
   0x5   :  { %p345_p0 = scmp.ne.s32.totalorder %s28_s16, %s344_s17  ;;  %p350_p2 = scmp.lt.s32.totalorder %s344_s17, %s344_s17 }
   0x7   :  { %p351_p3 = por %p350_p2, %p349_p1 }
   0x9   :  { %p352_p4 = pnand %p351_p3, %p345_p0 }
   0xb   :  { %355 = shalt.err (!%p352_p4)
}
   0xc   :  { %s423_s18 = smov 64   ;;  %s424_s19 = smov 4  }
   0xd   :  { %33 = dma.hbm_to_vmem [thread:$0]  %s471_s1, 256, %s28_s16, [#allocation6], %s423_s18, %s423_s18, %s424_s19  }
   0xe   :  { %s425_s22 = smov [#allocation2]   ;;  %s426_s24 = smov [#allocation7]  }
   0xf   :  { %s18_s23 = sshll.u32 %s425_s22, 4  ;;  %s39_s25 = sshll.u32 %s426_s24, 4  ;;  %s19_s23 = int_to_ptr.vmem [resolvable:$true] %s18_s23  ;;  %s40_s25 = int_to_ptr.vmem [resolvable:$true] %s39_s25 }
  0x10   :  { %s364_s26 = scalar_lea.vmem %s19_s23, 128  ;;  %p369_p6 = scmp.lt.s32.totalorder %s19_s23, %s19_s23 }
  0x11   :  { %p365_p5 = scmp.ne.s32.totalorder %s19_s23, %s364_s26  ;;  %p370_p7 = scmp.lt.s32.totalorder %s364_s26, %s364_s26 }
  0x13   :  { %p371_p8 = por %p370_p7, %p369_p6 }
  0x15   :  { %p372_p9 = pnand %p371_p8, %p365_p5 }
  0x17   :  { %375 = shalt.err (!%p372_p9)
}
  0x18   :  { %21 = dma.hbm_to_vmem [thread:$0]  %s470_s0, 128, %s19_s23, [#allocation3]  }
  0x19   :  { %s384_s29 = scalar_lea.vmem %s40_s25, 1024  ;;  %p389_p11 = scmp.lt.s32.totalorder %s40_s25, %s40_s25 }
  0x1a   :  { %p385_p10 = scmp.ne.s32.totalorder %s40_s25, %s384_s29  ;;  %p390_p12 = scmp.lt.s32.totalorder %s384_s29, %s384_s29 }
  0x1c   :  { %p391_p13 = por %p390_p12, %p389_p11 }
  0x1e   :  { %p392_p0 = pnand %p391_p13, %p385_p10 }
  0x20   :  { %395 = shalt.err (!%p392_p0)
}
  0x21   :  { %45 = dma.hbm_to_vmem [thread:$0]  %s472_s2, 1024, %s40_s25, [#allocation6], %s423_s18, %s423_s18, %s424_s19  }
  0x22   :  { %416 = dma.done.wait [#allocation3], 128  }
  0x23   :  { %417 = vsyncadd [#allocation3], 4294967168 }
  0x24   :  { %418 = dma.done.wait [#allocation6], 1280  }
  0x25   :  { %419 = vsyncadd [#allocation6], 4294966016  ;;  %v427_v0 = vmov 0.0   ;;  %vm428_vm0 = vmmov 0   ;;  %v320_v1 = vld [vmem:[#allocation5 + $0x8] sm:$0xff]   ;;  %v321_v2 = vld [vmem:[#allocation5] sm:$0xff]  }
  0x26   :  { %284 = vmatprep.subr.bf16.mxu0 %v427_v0  ;;  %288 = vmatprep.mubr.msk.bf16.mxu0 %vm428_vm0, %v427_v0  ;;  %v58_v3 = vld [vmem:[#allocation2] sm:$0xff]  ;;  %v322_v4 = vld [vmem:[#allocation7 + $0x38] sm:$0xff]   ;;  %v323_v6 = vld [vmem:[#allocation7 + $0x30] sm:$0xff]   ;;  %vm76_vm1 = vcmask 261120   ;;  %s429_s5 = smov [#allocation8]  }
  0x27   :  { %292 = vmatprep.subr.bf16.mxu1 %v427_v0  ;;  %308 = vmatprep.mubr.msk.bf16.mxu1 %vm428_vm0, %v427_v0  ;;  %v59_v5 = vpack.c.bf16 %v58_v3, %v58_v3  ;;  %v324_v7 = vld [vmem:[#allocation7 + $0x28] sm:$0xff]   ;;  %v325_v8 = vld [vmem:[#allocation7 + $0x20] sm:$0xff]   ;;  %v326_v9 = vld [vmem:[#allocation7 + $0x18] sm:$0xff]   ;;  %s250_s6 = sshll.u32 %s429_s5, 4  ;;  %s251_s6 = int_to_ptr.vmem [resolvable:$true] %s250_s6 }
  0x28   :  { %285 = vmatpush3.bf16.msra.mxu0 %v320_v1  ;;  %293 = vmatpush3.bf16.msra.mxu1 %v322_v4  ;;  %v327_v10 = vld [vmem:[#allocation7 + $0x10] sm:$0xff]   ;;  %v328_v11 = vld [vmem:[#allocation7 + $0x8] sm:$0xff]   ;;  %v329_v12 = vld [vmem:[#allocation7] sm:$0xff]   ;;  %p401_p2 = scmp.lt.s32.totalorder %s251_s6, %s251_s6 }
  0x29   :  { %286 = vmatprep.subr.bf16.mxu0 %v427_v0  ;;  %294 = vmatprep.subr.bf16.mxu1 %v427_v0  ;;  %v263_v19 = vld [vmem:[%s473_s3] ss:$0 sm:$0xff]  ;;  %s396_s3 = scalar_lea.vmem %s251_s6, 64 }
  0x2a   :  { %p397_p1 = scmp.ne.s32.totalorder %s251_s6, %s396_s3  ;;  %p402_p3 = scmp.lt.s32.totalorder %s396_s3, %s396_s3 }
  0x2c   :  { %287 = vmatpush3.bf16.msra.mxu0 %v321_v2  ;;  %295 = vmatpush3.bf16.msra.mxu1 %v323_v6  ;;  %p403_p4 = por %p402_p3, %p401_p2 }
  0x2d   :  { %296 = vmatprep.subr.bf16.mxu1 %v427_v0 }
  0x2e   :  { %p404_p5 = pnand %p403_p4, %p397_p1 }
  0x2f   :  { %289 = vmatmul.mubr.msk.bf16.vlgmr.msra.gmra.mxu0 %vm76_vm1, %v59_v5 }
  0x30   :  { %297 = vmatpush3.bf16.msra.mxu1 %v324_v7 }
  0x31   :  { %298 = vmatprep.subr.bf16.mxu1 %v427_v0 }
  0x34   :  { %299 = vmatpush3.bf16.msra.mxu1 %v325_v8 }
  0x35   :  { %300 = vmatprep.subr.bf16.mxu1 %v427_v0 }
  0x38   :  { %301 = vmatpush3.bf16.msra.mxu1 %v326_v9 }
  0x39   :  { %302 = vmatprep.subr.bf16.mxu1 %v427_v0 }
  0x3c   :  { %303 = vmatpush3.bf16.msra.mxu1 %v327_v10 }
  0x3d   :  { %304 = vmatprep.subr.bf16.mxu1 %v427_v0 }
  0x40   :  { %305 = vmatpush3.bf16.msra.mxu1 %v328_v11 }
  0x41   :  { %306 = vmatprep.subr.bf16.mxu1 %v427_v0 }
  0x44   :  { %307 = vmatpush3.bf16.msra.mxu1 %v329_v12 }
  0xef   :  { %v114_v13 = vpop.f32.mrf.mxu0 }
  0xf0   :  { %330 = vtanh.f32 %v114_v13 }
  0xf1   :  { %v290_v14 = vpop.f32.mrf.mxu0 }
  0xf3   :  { %v117_v15 = vpop.f32.mrf.mxu0 }
  0xf5   :  { %v291_v16 = vpop.f32.mrf.mxu0 }
  0xfd   :  { %v331_v17 = vpop.eup %330 }
  0xfe   :  { %v121_v18 = vpack.c.bf16 %v331_v17, %v331_v17 }
 0x100   :  { %309 = vmatmul.mubr.bf16.vlgmr.msra.gmra.mxu1 %v121_v18 }
 0x1c0   :  { %v227_v20 = vpop.f32.mrf.mxu1 }
 0x1c1   :  { %v228_v21 = vadd.f32 %v263_v19, %v227_v20 }
 0x1c2   :  { %v310_v22 = vpop.f32.mrf.mxu1 }
 0x1c3   :  { %233 = vmax.xlane.f32.xlu0 %v228_v21 }
 0x1c4   :  { %v230_v23 = vpop.f32.mrf.mxu1 }
 0x1c6   :  { %v311_v24 = vpop.f32.mrf.mxu1 }
 0x24c   :  { %v234_v25 = vpop.xlane.xlu0 %233 }
 0x24d   :  { %v235_v26 = vsub.f32 %v228_v21, %v234_v25 }
 0x24f   :  { %v236_v27 = vmul.f32 1.442695, %v235_v26 }
 0x251   :  { %332 = vpow2.f32 %v236_v27 }
 0x25e   :  { %v333_v28 = vpop.eup %332 }
 0x25f   :  { %238 = vadd.xlane.f32.xlu0 %v333_v28 }
 0x2e8   :  { %v239_v29 = vpop.xlane.xlu0 %238 }
 0x2e9   :  { %334 = vrcp.f32 %v239_v29 }
 0x2f6   :  { %v335_v30 = vpop.eup %334 }
 0x2f7   :  { %v241_v31 = vmul.f32 %v335_v30, %v333_v28 }
 0x2f9   :  { %v242_v32 = vpack.c.bf16 %v241_v31, %v241_v31 }
 0x2fb   :  { %243 = vst [vmem:[#allocation8] sm:$0xf] %v242_v32 }
 0x2fc   :  { %407 = shalt.err (!%p404_p5)
}
 0x2fd   :  { %253 = dma.vmem_to_hbm [thread:$0]  %s251_s6, 64, %s474_s4, [#allocation4]  }
 0x2fe   :  { %420 = dma.done.wait [#allocation4], 64  }
 0x2ff   :  { %421 = vsyncadd [#allocation4], 4294967232 }
 0x300   :  { %257 = vsyncpa [#allocation3], 1 }
 0x301   :  { %258 = vsyncpa [#allocation6], 1 }
 0x302   :  { %259 = vsyncpa [#allocation4], 1 }

</bundles_post_ra>
